<compile_context>
chip_gen: v7x
topology: tpu7x:2x2x1
jax: 0.10.0
libtpu: 0.0.40
codegen_flags: <defaults>
</compile_context>

<pallas_src>
import jax
import jax.numpy as jnp
from jax.experimental import pallas as pl
from jax.experimental.pallas import tpu as pltpu

N_EMBD = 128
BLOCK_SIZE = 128
NUM_HEADS = 4
HEAD_SIZE = N_EMBD // NUM_HEADS      # 32
QKV_DIM = 3 * N_EMBD                 # 384 (packed q|k|v projection)


def _mha_kernel(x_ref, wqkv_ref, wo_ref, bo_ref, o_ref, qkv_ref):
    # x_ref: (BT, T, C) slab of batch elements.
    BT, T, C = x_ref.shape

    # Fused q|k|v projection over the flattened (BT*T, C) slab; the C**-0.5
    # score scale is already folded into the q columns of wqkv.
    x = x_ref[...].reshape(BT * T, C).astype(jnp.bfloat16)
    qkv = jnp.dot(x, wqkv_ref[...], preferred_element_type=jnp.float32)
    qkv_ref[...] = qkv.astype(jnp.bfloat16)      # single lane-dense bf16 store

    # Causal mask built in-register (TPU iota must be >= 2-D).
    row = jax.lax.broadcasted_iota(jnp.int32, (T, T), 0)
    col = jax.lax.broadcasted_iota(jnp.int32, (T, T), 1)
    causal = col <= row

    bias = bo_ref[...]                            # (1, C) f32

    # Attention core: loop over (batch-in-slab, head); BT and NUM_HEADS are
    # small static ints, so unroll in Python. Score tiles stay (T, T) — no
    # (BT, H, T, T) tensor is ever materialized.
    for b in range(BT):
        rows = slice(b * T, (b + 1) * T)
        acc = jnp.zeros((T, C), jnp.float32)      # per-head-accumulated projection
        for h in range(NUM_HEADS):
            c0 = h * HEAD_SIZE
            qh = qkv_ref[rows, c0:c0 + HEAD_SIZE]                      # bf16 (T, hs)
            kh = qkv_ref[rows, C + c0:C + c0 + HEAD_SIZE]
            vh = qkv_ref[rows, 2 * C + c0:2 * C + c0 + HEAD_SIZE]

            # scores = (q * C**-0.5) @ k^T  (scale pre-folded into wqkv).
            s = jax.lax.dot_general(
                qh, kh, (((1,), (1,)), ((), ())),
                preferred_element_type=jnp.float32)                    # (T, T) f32
            s = jnp.where(causal, s, -1e30)

            # Softmax in f32, normalization deferred to the (T, hs) PV output.
            s = s - jnp.max(s, axis=-1, keepdims=True)
            p = jnp.exp(s)
            l = jnp.sum(p, axis=-1, keepdims=True)
            # Dropout(0.02) on attention weights: identity in eval mode.

            oh = jnp.dot(p.astype(jnp.bfloat16), vh,
                         preferred_element_type=jnp.float32)           # (T, hs)
            oh = oh * pl.reciprocal(l, approx=True)                    # EUP divide

            # Output projection accumulated per head (no concat scratch).
            acc = acc + jnp.dot(oh.astype(jnp.bfloat16),
                                wo_ref[c0:c0 + HEAD_SIZE, :],
                                preferred_element_type=jnp.float32)

        # Dropout(0.02) on projection output: identity in eval mode.
        o_ref[b] = (acc + bias).astype(o_ref.dtype)


def _choose_bt(batch, seq):
    """Pick batch elements per grid step: aim for >=512 flattened rows while
    keeping >=2 grid steps (megacore / v7x dual-TC) when the batch allows."""
    bt = max(1, 512 // max(seq, 1))
    bt = min(bt, batch)
    if batch >= 2:
        bt = min(bt, max(1, batch // 2))
    return bt


def pack_params(params):
    """One-time weight prep (hoisted out of the per-call path): pack q|k|v into
    one (C, 3C) weight, fold the C**-0.5 score scale into the q columns, and
    cast weights to bf16 (MXU-native)."""
    wq, wk, wv, wo, bo = params
    scale = float(N_EMBD) ** -0.5     # PyTorch: wei = q @ k^T * C**(-0.5), C = n_embd
    wqkv = jnp.concatenate([wq * scale, wk, wv], axis=1).astype(jnp.bfloat16)
    wo_bf = wo.astype(jnp.bfloat16)
    bo_row = bo.reshape(1, N_EMBD).astype(jnp.float32)
    return wqkv, wo_bf, bo_row


def mha_pallas(x, packed_params, *, bt=None):
    """Multi-head causal self-attention.  x: (B, T, n_embd) f32 -> (B, T, n_embd) f32."""
    wqkv, wo_bf, bo_row = packed_params
    B, T, C = x.shape
    assert C == N_EMBD and T <= BLOCK_SIZE

    if bt is None:
        bt = _choose_bt(B, T)
    b_pad = ((B + bt - 1) // bt) * bt
    if b_pad != B:
        x = jnp.pad(x, ((0, b_pad - B), (0, 0), (0, 0)))

    const2 = lambda i: (0, 0)
    out = pl.pallas_call(
        _mha_kernel,
        out_shape=jax.ShapeDtypeStruct((b_pad, T, C), x.dtype),
        grid_spec=pltpu.PrefetchScalarGridSpec(
            num_scalar_prefetch=0,
            grid=(b_pad // bt,),
            in_specs=[
                pl.BlockSpec((bt, T, C), lambda i: (i, 0, 0)),   # x slab (pipelined)
                # Constant index_map => weights stay resident across the grid.
                pl.BlockSpec((C, QKV_DIM), const2),              # Wqkv (bf16)
                pl.BlockSpec((C, C), const2),                    # Wo   (bf16)
                pl.BlockSpec((1, C), const2),                    # bias (f32)
            ],
            out_specs=pl.BlockSpec((bt, T, C), lambda i: (i, 0, 0)),
            # bf16 staging buffer for the fused qkv slab (bounds vreg pressure).
            scratch_shapes=[pltpu.VMEM((bt * T, QKV_DIM), jnp.bfloat16)],
        ),
        compiler_params=pltpu.CompilerParams(
            dimension_semantics=("parallel",)),                  # shard batch over TCs
    )(x, wqkv, wo_bf, bo_row)
    return out[:B] if b_pad != B else out


def init_params(key):
    """nn.Linear default init: U(-1/sqrt(fan_in), +1/sqrt(fan_in)); q/k/v bias-free."""
    ks = jax.random.split(key, 5)
    bound = 1.0 / float(N_EMBD) ** 0.5

    def u(k, shape):
        return jax.random.uniform(k, shape, jnp.float32, -bound, bound)

    wq = u(ks[0], (N_EMBD, NUM_HEADS * HEAD_SIZE))
    wk = u(ks[1], (N_EMBD, NUM_HEADS * HEAD_SIZE))
    wv = u(ks[2], (N_EMBD, NUM_HEADS * HEAD_SIZE))
    wo = u(ks[3], (N_EMBD, N_EMBD))
    bo = u(ks[4], (N_EMBD,))
    return (wq, wk, wv, wo, bo)


def mha_ref(x, params):
    """Pure-JAX f32 reference mirroring the PyTorch forward (eval mode)."""
    wq, wk, wv, wo, bo = params
    B, T, C = x.shape
    H, hs = NUM_HEADS, HEAD_SIZE
    q = (x @ wq).reshape(B, T, H, hs).transpose(0, 2, 1, 3)
    k = (x @ wk).reshape(B, T, H, hs).transpose(0, 2, 1, 3)
    v = (x @ wv).reshape(B, T, H, hs).transpose(0, 2, 1, 3)
    s = jnp.einsum("bhtd,bhsd->bhts", q, k) * (C ** -0.5)
    mask = jnp.tril(jnp.ones((T, T), dtype=bool))
    s = jnp.where(mask, s, -jnp.inf)
    p = jax.nn.softmax(s, axis=-1)
    o = jnp.einsum("bhts,bhsd->bhtd", p, v)
    o = o.transpose(0, 2, 1, 3).reshape(B, T, H * hs)
    return o @ wo + bo


if __name__ == "__main__":
    key = jax.random.PRNGKey(0)
    kx, kx2, kp = jax.random.split(key, 3)

    params = init_params(kp)
    packed = pack_params(params)   # one-time weight prep (hoisted out of the call)

    # Small shape (exercises BT=1, grid=2).
    B, T = 2, 8
    x = jax.random.normal(kx, (B, T, N_EMBD), jnp.float32)
    out = jax.block_until_ready(mha_pallas(x, packed))
    ref = mha_ref(x, params)
    assert out.shape == (B, T, N_EMBD)
    err = float(jnp.max(jnp.abs(out - ref)))
    assert jnp.allclose(out, ref, atol=3e-2, rtol=3e-2), f"mismatch, max abs err {err}"

    # Full-block shape (exercises the multi-batch slab path: BT=2, grid=2).
    B2, T2 = 4, BLOCK_SIZE
    x2 = jax.random.normal(kx2, (B2, T2, N_EMBD), jnp.float32)
    out2 = jax.block_until_ready(mha_pallas(x2, packed))
    ref2 = mha_ref(x2, params)
    err2 = float(jnp.max(jnp.abs(out2 - ref2)))
    assert jnp.allclose(out2, ref2, atol=3e-2, rtol=3e-2), f"mismatch, max abs err {err2}"

    print("KERNEL_OK")
</pallas_src>

<mosaic_0001>
module attributes {stable_mosaic.version = 11 : i64} {
  func.func @_mha_kernel(%arg0: i32, %arg1: memref<1x8x128xf32, #tpu.memory_space<vmem>>, %arg2: memref<128x384xbf16, #tpu.memory_space<vmem>>, %arg3: memref<128x128xbf16, #tpu.memory_space<vmem>>, %arg4: memref<1x128xf32, #tpu.memory_space<vmem>>, %arg5: memref<1x8x128xf32, #tpu.memory_space<vmem>>, %arg6: memref<8x384xbf16, #tpu.memory_space<vmem>>) attributes {dimension_semantics = [#tpu.dimension_semantics<parallel>], iteration_bounds = array<i64: 2>, scalar_prefetch = 0 : i64, scratch_operands = 1 : i64, tpu.core_type = #tpu.core_type<tc>, window_params = [{transform_indices = @transform_0, window_bounds = array<i64: 1, 8, 128>}, {pipeline_mode = #tpu.pipeline_mode<synchronous>, transform_indices = @transform_1, window_bounds = array<i64: 128, 384>}, {pipeline_mode = #tpu.pipeline_mode<synchronous>, transform_indices = @transform_2, window_bounds = array<i64: 128, 128>}, {pipeline_mode = #tpu.pipeline_mode<synchronous>, transform_indices = @transform_3, window_bounds = array<i64: 1, 128>}, {transform_indices = @transform_4, window_bounds = array<i64: 1, 8, 128>}]} {
    %c0 = arith.constant 0 : index
    %c0_0 = arith.constant 0 : index
    %c0_1 = arith.constant 0 : index
    %0 = vector.load %arg1[%c0, %c0_0, %c0_1] : memref<1x8x128xf32, #tpu.memory_space<vmem>>, vector<1x8x128xf32>
    %1 = vector.shape_cast %0 : vector<1x8x128xf32> to vector<8x128xf32>
    %2 = arith.truncf %1 : vector<8x128xf32> to vector<8x128xbf16>
    %c0_2 = arith.constant 0 : index
    %c0_3 = arith.constant 0 : index
    %3 = vector.load %arg2[%c0_2, %c0_3] : memref<128x384xbf16, #tpu.memory_space<vmem>>, vector<128x384xbf16>
    %cst = arith.constant dense<0.000000e+00> : vector<8x384xf32>
    %4 = tpu.matmul %2, %3, %cst {dimension_numbers = #tpu.dot_dimension_numbers<[1], [0], [0], [1], [0, 0, 1, 1], [], []>} : vector<8x128xbf16>, vector<128x384xbf16>, vector<8x384xf32> -> vector<8x384xf32>
    %5 = arith.truncf %4 : vector<8x384xf32> to vector<8x384xbf16>
    %c0_4 = arith.constant 0 : index
    %c0_5 = arith.constant 0 : index
    %6 = vector.load %arg6[%c0_4, %c0_5] : memref<8x384xbf16, #tpu.memory_space<vmem>>, vector<8x384xbf16>
    tpu.vector_store %arg6[%c0_4, %c0_5], %5 {strides = array<i32>} : memref<8x384xbf16, #tpu.memory_space<vmem>>, vector<8x384xbf16>,
    %7 = tpu.iota {dimensions = array<i32: 0>} : vector<8x8xi32>
    %8 = tpu.iota {dimensions = array<i32: 1>} : vector<8x8xi32>
    %9 = arith.cmpi sle, %8, %7 : vector<8x8xi32>
    %c0_6 = arith.constant 0 : index
    %c0_7 = arith.constant 0 : index
    %10 = vector.load %arg4[%c0_6, %c0_7] : memref<1x128xf32, #tpu.memory_space<vmem>>, vector<1x128xf32>
    %cst_8 = arith.constant 0.000000e+00 : f32
    %11 = vector.broadcast %cst_8 : f32 to vector<8x128xf32>
    %c0_9 = arith.constant 0 : index
    %c0_10 = arith.constant 0 : index
    %12 = vector.load %arg6[%c0_9, %c0_10] : memref<8x384xbf16, #tpu.memory_space<vmem>>, vector<8x32xbf16>
    %c0_11 = arith.constant 0 : index
    %c128 = arith.constant 128 : index
    %13 = vector.load %arg6[%c0_11, %c128] : memref<8x384xbf16, #tpu.memory_space<vmem>>, vector<8x32xbf16>
    %c0_12 = arith.constant 0 : index
    %c256 = arith.constant 256 : index
    %14 = vector.load %arg6[%c0_12, %c256] : memref<8x384xbf16, #tpu.memory_space<vmem>>, vector<8x32xbf16>
    %cst_13 = arith.constant dense<0.000000e+00> : vector<8x8xf32>
    %15 = tpu.matmul %12, %13, %cst_13 {dimension_numbers = #tpu.dot_dimension_numbers<[1], [1], [0], [0], [0, 0, 1, 0], [], []>} : vector<8x32xbf16>, vector<8x32xbf16>, vector<8x8xf32> -> vector<8x8xf32>
    %cst_14 = arith.constant -1.000000e+30 : f32
    %16 = vector.broadcast %cst_14 : f32 to vector<8x8xf32>
    %17 = arith.select %9, %15, %16 : vector<8x8xi1>, vector<8x8xf32>
    %cst_15 = arith.constant dense<0xFF800000> : vector<8xf32>
    %18 = vector.multi_reduction <maximumf>, %17, %cst_15 [1] : vector<8x8xf32> to vector<8xf32>
    %19 = vector.shape_cast %18 : vector<8xf32> to vector<8x1xf32>
    %20 = vector.broadcast %19 : vector<8x1xf32> to vector<8x8xf32>
    %21 = arith.subf %17, %20 : vector<8x8xf32>
    %22 = math.exp %21 : vector<8x8xf32>
    %cst_16 = arith.constant dense<0.000000e+00> : vector<8xf32>
    %23 = vector.multi_reduction <add>, %22, %cst_16 [1] : vector<8x8xf32> to vector<8xf32>
    %24 = vector.shape_cast %23 : vector<8xf32> to vector<8x1xf32>
    %25 = arith.truncf %22 : vector<8x8xf32> to vector<8x8xbf16>
    %cst_17 = arith.constant dense<0.000000e+00> : vector<8x32xf32>
    %26 = tpu.matmul %25, %14, %cst_17 {dimension_numbers = #tpu.dot_dimension_numbers<[1], [0], [0], [1], [0, 0, 1, 1], [], []>} : vector<8x8xbf16>, vector<8x32xbf16>, vector<8x32xf32> -> vector<8x32xf32>
    %27 = tpu.reciprocal %24 {approx = true} : vector<8x1xf32> -> vector<8x1xf32>
    %28 = vector.broadcast %27 : vector<8x1xf32> to vector<8x32xf32>
    %29 = arith.mulf %26, %28 : vector<8x32xf32>
    %30 = arith.truncf %29 : vector<8x32xf32> to vector<8x32xbf16>
    %c0_18 = arith.constant 0 : index
    %c0_19 = arith.constant 0 : index
    %31 = vector.load %arg3[%c0_18, %c0_19] : memref<128x128xbf16, #tpu.memory_space<vmem>>, vector<32x128xbf16>
    %cst_20 = arith.constant dense<0.000000e+00> : vector<8x128xf32>
    %32 = tpu.matmul %30, %31, %cst_20 {dimension_numbers = #tpu.dot_dimension_numbers<[1], [0], [0], [1], [0, 0, 1, 1], [], []>} : vector<8x32xbf16>, vector<32x128xbf16>, vector<8x128xf32> -> vector<8x128xf32>
    %33 = arith.addf %11, %32 : vector<8x128xf32>
    %c0_21 = arith.constant 0 : index
    %c32 = arith.constant 32 : index
    %34 = vector.load %arg6[%c0_21, %c32] : memref<8x384xbf16, #tpu.memory_space<vmem>>, vector<8x32xbf16>
    %c0_22 = arith.constant 0 : index
    %c160 = arith.constant 160 : index
    %35 = vector.load %arg6[%c0_22, %c160] : memref<8x384xbf16, #tpu.memory_space<vmem>>, vector<8x32xbf16>
    %c0_23 = arith.constant 0 : index
    %c288 = arith.constant 288 : index
    %36 = vector.load %arg6[%c0_23, %c288] : memref<8x384xbf16, #tpu.memory_space<vmem>>, vector<8x32xbf16>
    %cst_24 = arith.constant dense<0.000000e+00> : vector<8x8xf32>
    %37 = tpu.matmul %34, %35, %cst_24 {dimension_numbers = #tpu.dot_dimension_numbers<[1], [1], [0], [0], [0, 0, 1, 0], [], []>} : vector<8x32xbf16>, vector<8x32xbf16>, vector<8x8xf32> -> vector<8x8xf32>
    %cst_25 = arith.constant -1.000000e+30 : f32
    %38 = vector.broadcast %cst_25 : f32 to vector<8x8xf32>
    %39 = arith.select %9, %37, %38 : vector<8x8xi1>, vector<8x8xf32>
    %cst_26 = arith.constant dense<0xFF800000> : vector<8xf32>
    %40 = vector.multi_reduction <maximumf>, %39, %cst_26 [1] : vector<8x8xf32> to vector<8xf32>
    %41 = vector.shape_cast %40 : vector<8xf32> to vector<8x1xf32>
    %42 = vector.broadcast %41 : vector<8x1xf32> to vector<8x8xf32>
    %43 = arith.subf %39, %42 : vector<8x8xf32>
    %44 = math.exp %43 : vector<8x8xf32>
    %cst_27 = arith.constant dense<0.000000e+00> : vector<8xf32>
    %45 = vector.multi_reduction <add>, %44, %cst_27 [1] : vector<8x8xf32> to vector<8xf32>
    %46 = vector.shape_cast %45 : vector<8xf32> to vector<8x1xf32>
    %47 = arith.truncf %44 : vector<8x8xf32> to vector<8x8xbf16>
    %cst_28 = arith.constant dense<0.000000e+00> : vector<8x32xf32>
    %48 = tpu.matmul %47, %36, %cst_28 {dimension_numbers = #tpu.dot_dimension_numbers<[1], [0], [0], [1], [0, 0, 1, 1], [], []>} : vector<8x8xbf16>, vector<8x32xbf16>, vector<8x32xf32> -> vector<8x32xf32>
    %49 = tpu.reciprocal %46 {approx = true} : vector<8x1xf32> -> vector<8x1xf32>
    %50 = vector.broadcast %49 : vector<8x1xf32> to vector<8x32xf32>
    %51 = arith.mulf %48, %50 : vector<8x32xf32>
    %52 = arith.truncf %51 : vector<8x32xf32> to vector<8x32xbf16>
    %c32_29 = arith.constant 32 : index
    %c0_30 = arith.constant 0 : index
    %53 = vector.load %arg3[%c32_29, %c0_30] : memref<128x128xbf16, #tpu.memory_space<vmem>>, vector<32x128xbf16>
    %cst_31 = arith.constant dense<0.000000e+00> : vector<8x128xf32>
    %54 = tpu.matmul %52, %53, %cst_31 {dimension_numbers = #tpu.dot_dimension_numbers<[1], [0], [0], [1], [0, 0, 1, 1], [], []>} : vector<8x32xbf16>, vector<32x128xbf16>, vector<8x128xf32> -> vector<8x128xf32>
    %55 = arith.addf %33, %54 : vector<8x128xf32>
    %c0_32 = arith.constant 0 : index
    %c64 = arith.constant 64 : index
    %56 = vector.load %arg6[%c0_32, %c64] : memref<8x384xbf16, #tpu.memory_space<vmem>>, vector<8x32xbf16>
    %c0_33 = arith.constant 0 : index
    %c192 = arith.constant 192 : index
    %57 = vector.load %arg6[%c0_33, %c192] : memref<8x384xbf16, #tpu.memory_space<vmem>>, vector<8x32xbf16>
    %c0_34 = arith.constant 0 : index
    %c320 = arith.constant 320 : index
    %58 = vector.load %arg6[%c0_34, %c320] : memref<8x384xbf16, #tpu.memory_space<vmem>>, vector<8x32xbf16>
    %cst_35 = arith.constant dense<0.000000e+00> : vector<8x8xf32>
    %59 = tpu.matmul %56, %57, %cst_35 {dimension_numbers = #tpu.dot_dimension_numbers<[1], [1], [0], [0], [0, 0, 1, 0], [], []>} : vector<8x32xbf16>, vector<8x32xbf16>, vector<8x8xf32> -> vector<8x8xf32>
    %cst_36 = arith.constant -1.000000e+30 : f32
    %60 = vector.broadcast %cst_36 : f32 to vector<8x8xf32>
    %61 = arith.select %9, %59, %60 : vector<8x8xi1>, vector<8x8xf32>
    %cst_37 = arith.constant dense<0xFF800000> : vector<8xf32>
    %62 = vector.multi_reduction <maximumf>, %61, %cst_37 [1] : vector<8x8xf32> to vector<8xf32>
    %63 = vector.shape_cast %62 : vector<8xf32> to vector<8x1xf32>
    %64 = vector.broadcast %63 : vector<8x1xf32> to vector<8x8xf32>
    %65 = arith.subf %61, %64 : vector<8x8xf32>
    %66 = math.exp %65 : vector<8x8xf32>
    %cst_38 = arith.constant dense<0.000000e+00> : vector<8xf32>
    %67 = vector.multi_reduction <add>, %66, %cst_38 [1] : vector<8x8xf32> to vector<8xf32>
    %68 = vector.shape_cast %67 : vector<8xf32> to vector<8x1xf32>
    %69 = arith.truncf %66 : vector<8x8xf32> to vector<8x8xbf16>
    %cst_39 = arith.constant dense<0.000000e+00> : vector<8x32xf32>
    %70 = tpu.matmul %69, %58, %cst_39 {dimension_numbers = #tpu.dot_dimension_numbers<[1], [0], [0], [1], [0, 0, 1, 1], [], []>} : vector<8x8xbf16>, vector<8x32xbf16>, vector<8x32xf32> -> vector<8x32xf32>
    %71 = tpu.reciprocal %68 {approx = true} : vector<8x1xf32> -> vector<8x1xf32>
    %72 = vector.broadcast %71 : vector<8x1xf32> to vector<8x32xf32>
    %73 = arith.mulf %70, %72 : vector<8x32xf32>
    %74 = arith.truncf %73 : vector<8x32xf32> to vector<8x32xbf16>
    %c64_40 = arith.constant 64 : index
    %c0_41 = arith.constant 0 : index
    %75 = vector.load %arg3[%c64_40, %c0_41] : memref<128x128xbf16, #tpu.memory_space<vmem>>, vector<32x128xbf16>
    %cst_42 = arith.constant dense<0.000000e+00> : vector<8x128xf32>
    %76 = tpu.matmul %74, %75, %cst_42 {dimension_numbers = #tpu.dot_dimension_numbers<[1], [0], [0], [1], [0, 0, 1, 1], [], []>} : vector<8x32xbf16>, vector<32x128xbf16>, vector<8x128xf32> -> vector<8x128xf32>
    %77 = arith.addf %55, %76 : vector<8x128xf32>
    %c0_43 = arith.constant 0 : index
    %c96 = arith.constant 96 : index
    %78 = vector.load %arg6[%c0_43, %c96] : memref<8x384xbf16, #tpu.memory_space<vmem>>, vector<8x32xbf16>
    %c0_44 = arith.constant 0 : index
    %c224 = arith.constant 224 : index
    %79 = vector.load %arg6[%c0_44, %c224] : memref<8x384xbf16, #tpu.memory_space<vmem>>, vector<8x32xbf16>
    %c0_45 = arith.constant 0 : index
    %c352 = arith.constant 352 : index
    %80 = vector.load %arg6[%c0_45, %c352] : memref<8x384xbf16, #tpu.memory_space<vmem>>, vector<8x32xbf16>
    %cst_46 = arith.constant dense<0.000000e+00> : vector<8x8xf32>
    %81 = tpu.matmul %78, %79, %cst_46 {dimension_numbers = #tpu.dot_dimension_numbers<[1], [1], [0], [0], [0, 0, 1, 0], [], []>} : vector<8x32xbf16>, vector<8x32xbf16>, vector<8x8xf32> -> vector<8x8xf32>
    %cst_47 = arith.constant -1.000000e+30 : f32
    %82 = vector.broadcast %cst_47 : f32 to vector<8x8xf32>
    %83 = arith.select %9, %81, %82 : vector<8x8xi1>, vector<8x8xf32>
    %cst_48 = arith.constant dense<0xFF800000> : vector<8xf32>
    %84 = vector.multi_reduction <maximumf>, %83, %cst_48 [1] : vector<8x8xf32> to vector<8xf32>
    %85 = vector.shape_cast %84 : vector<8xf32> to vector<8x1xf32>
    %86 = vector.broadcast %85 : vector<8x1xf32> to vector<8x8xf32>
    %87 = arith.subf %83, %86 : vector<8x8xf32>
    %88 = math.exp %87 : vector<8x8xf32>
    %cst_49 = arith.constant dense<0.000000e+00> : vector<8xf32>
    %89 = vector.multi_reduction <add>, %88, %cst_49 [1] : vector<8x8xf32> to vector<8xf32>
    %90 = vector.shape_cast %89 : vector<8xf32> to vector<8x1xf32>
    %91 = arith.truncf %88 : vector<8x8xf32> to vector<8x8xbf16>
    %cst_50 = arith.constant dense<0.000000e+00> : vector<8x32xf32>
    %92 = tpu.matmul %91, %80, %cst_50 {dimension_numbers = #tpu.dot_dimension_numbers<[1], [0], [0], [1], [0, 0, 1, 1], [], []>} : vector<8x8xbf16>, vector<8x32xbf16>, vector<8x32xf32> -> vector<8x32xf32>
    %93 = tpu.reciprocal %90 {approx = true} : vector<8x1xf32> -> vector<8x1xf32>
    %94 = vector.broadcast %93 : vector<8x1xf32> to vector<8x32xf32>
    %95 = arith.mulf %92, %94 : vector<8x32xf32>
    %96 = arith.truncf %95 : vector<8x32xf32> to vector<8x32xbf16>
    %c96_51 = arith.constant 96 : index
    %c0_52 = arith.constant 0 : index
    %97 = vector.load %arg3[%c96_51, %c0_52] : memref<128x128xbf16, #tpu.memory_space<vmem>>, vector<32x128xbf16>
    %cst_53 = arith.constant dense<0.000000e+00> : vector<8x128xf32>
    %98 = tpu.matmul %96, %97, %cst_53 {dimension_numbers = #tpu.dot_dimension_numbers<[1], [0], [0], [1], [0, 0, 1, 1], [], []>} : vector<8x32xbf16>, vector<32x128xbf16>, vector<8x128xf32> -> vector<8x128xf32>
    %99 = arith.addf %77, %98 : vector<8x128xf32>
    %100 = vector.broadcast %10 : vector<1x128xf32> to vector<8x128xf32>
    %101 = arith.addf %99, %100 : vector<8x128xf32>
    %c0_54 = arith.constant 0 : index
    %c0_55 = arith.constant 0 : index
    %c0_56 = arith.constant 0 : index
    %102 = vector.load %arg5[%c0_54, %c0_55, %c0_56] : memref<1x8x128xf32, #tpu.memory_space<vmem>>, vector<1x8x128xf32>
    %103 = vector.shape_cast %102 : vector<1x8x128xf32> to vector<8x128xf32>
    %104 = vector.shape_cast %101 : vector<8x128xf32> to vector<1x8x128xf32>
    tpu.vector_store %arg5[%c0_54, %c0_55, %c0_56], %104 {strides = array<i32>} : memref<1x8x128xf32, #tpu.memory_space<vmem>>, vector<1x8x128xf32>,
    return
  }
  func.func @transform_0(%arg0: i32) -> (i32, i32, i32) {
    %c0_i32 = arith.constant 0 : i32
    %c0_i32_0 = arith.constant 0 : i32
    %c0_i32_1 = arith.constant 0 : i32
    return %arg0, %c0_i32, %c0_i32_0 : i32, i32, i32
  }
  func.func @transform_1(%arg0: i32) -> (i32, i32) {
    %c0_i32 = arith.constant 0 : i32
    %c0_i32_0 = arith.constant 0 : i32
    %c0_i32_1 = arith.constant 0 : i32
    return %c0_i32, %c0_i32_0 : i32, i32
  }
  func.func @transform_2(%arg0: i32) -> (i32, i32) {
    %c0_i32 = arith.constant 0 : i32
    %c0_i32_0 = arith.constant 0 : i32
    %c0_i32_1 = arith.constant 0 : i32
    return %c0_i32, %c0_i32_0 : i32, i32
  }
  func.func @transform_3(%arg0: i32) -> (i32, i32) {
    %c0_i32 = arith.constant 0 : i32
    %c0_i32_0 = arith.constant 0 : i32
    %c0_i32_1 = arith.constant 0 : i32
    return %c0_i32, %c0_i32_0 : i32, i32
  }
  func.func @transform_4(%arg0: i32) -> (i32, i32, i32) {
    %c0_i32 = arith.constant 0 : i32
    %c0_i32_0 = arith.constant 0 : i32
    %c0_i32_1 = arith.constant 0 : i32
    return %arg0, %c0_i32, %c0_i32_0 : i32, i32, i32
  }
}

</mosaic_0001>

<bundles_post_ra>
// kernel: tpu_custom_call.1
= control target key start
LH: loop header
LB: loop body
LE: loop exit
PB: predicated region body
PF: predicated region fallthrough
CT: control target
= control target key end

     0   :  { %9 = vsyncpa [#allocation4], 0  ;;  %s2210_s0 = inlined_call_operand.hbm [shape: f32[2,8,128], index: 0, kind: input, shape index: {}]   ;;  %s2211_s1 = inlined_call_operand.hbm [shape: bf16[128,384], index: 1, kind: input, shape index: {}]   ;;  %s2212_s2 = inlined_call_operand.hbm [shape: bf16[128,128], index: 2, kind: input, shape index: {}]   ;;  %s2213_s3 = inlined_call_operand.vmem [shape: f32[1,128], index: 3, kind: input, shape index: {}]   ;;  %s2214_s4 = inlined_call_operand.hbm [shape: f32[2,8,128], index: 4, kind: output, shape index: {}]  }
   0x1   :  { %11 = vsyncpa [#allocation4 + $0x1], 0 }
   0x2   :  { %12 = vsyncpa [#allocation7], 0 }
   0x3   :  { %13 = vsyncpa [#allocation5], 0 }
   0x4   :  { %15 = vsyncpa [#allocation5 + $0x1], 0  ;;  %s1851_s15 = smov 0   ;;  %s1853_s16 = smov 0  }
   0x5   :  { %s1855_s17 = smov 0   ;;  %s1857_s18 = smov 0  }
   0x6 LB: > { %s1872_s19 = sadd.s32 4294967295, %s1810_s18   ;;  %s1313_s20 = sadd.s32 4294967294, %s1810_s18   ;;  %s1810_s18 = sphi %s1857_s18, %s2234_s18   ;;  %s1806_s17 = sphi %s1855_s17, %s2233_s17   ;;  %s1802_s16 = sphi %s1853_s16, %s2232_s16   ;;  %s1798_s15 = sphi %s1851_s15, %s2231_s15  }
   0x7   : > { %p41_p0 = scmp.ne.s32.totalorder %s1802_s16, %s1798_s15  ;;  %p2215_p1 = scmp.eq.s32.totalorder %s1872_s19, 0 }
   0x8   : > { %p134_p3 = scmp.eq.s32.totalorder %s1313_s20, 1  ;;  %p1314_p5 = scmp.ge.s32.totalorder %s1810_s18, 1 }
   0x9   : > { %p1881_p4 = por %p2215_p1, %p41_p0  ;;  %p141_p7 = scmp.lt.s32.totalorder %s1810_s18, 3 }
   0xa   : > { %p1886_p6 = por %p134_p3, %p41_p0  ;;  %s1812_s24 = smov [#allocation6]  }
   0xb   : > { %s2218_s21 = scalar_select %p1881_p4, 1, 0 }
   0xc   : > { %s2219_s22 = scalar_select %p1886_p6, 1, 0 }
   0xd   : > { %p1891_p8 = pnand %p1314_p5, %p141_p7  ;;  %s153_s25 = sshll.u32 %s1812_s24, 4  ;;  %s1895_s25 = int_to_ptr.vmem [resolvable:$true] %s153_s25 }
   0xe   : > { %s1813_s27 = smov [#allocation8]   ;;  %s1654_s5 = scalar_lea.hbm %s2211_s1, 3072 }
   0xf   : > { %p1530_p9 = pneg %p1891_p8  ;;  %s166_s28 = sshll.u32 %s1813_s27, 4  ;;  %s1906_s28 = int_to_ptr.vmem [resolvable:$true] %s166_s28 }
  0x10   : > { %p1655_p12 = scmp.ne.s32.totalorder %s2211_s1, %s1654_s5  ;;  %p1661_p5 = scmp.lt.u32.totalorder %s1654_s5, %s2211_s1 }
  0x11   : > { %p1902_p11 = pnand %p1530_p9, %p2215_p1 }
  0x13   : > { %p1656_p13 = pneg %p1902_p11 }
  0x15   : > { %p1657_p0 = pnand %p1656_p13, %p1655_p12 }
  0x17   : > { %p1658_p3 = pneg %p1657_p0 }
  0x19   : > { %p1663_p7 = pnand %p1661_p5, %p1658_p3 }
  0x1b   : > { %1666 = shalt.err (!%p1663_p7)
}
  0x1c   : > { %s1667_s10 = scalar_lea.vmem %s1895_s25, 3072  ;;  %p1675_p2 = scmp.lt.s32.totalorder %s1895_s25, %s1895_s25 }
  0x1d   : > { %p1668_p9 = scmp.ne.s32.totalorder %s1895_s25, %s1667_s10  ;;  %p1676_p12 = scmp.lt.s32.totalorder %s1667_s10, %s1667_s10 }
  0x1f   : > { %p1670_p10 = pnand %p1668_p9, %p1656_p13  ;;  %p1677_p0 = por %p1676_p12, %p1675_p2 }
  0x21   : > { %p1671_p1 = pneg %p1670_p10 }
  0x23   : > { %p1678_p6 = pnand %p1677_p0, %p1671_p1 }
  0x25   : > { %1681 = shalt.err (!%p1678_p6)
}
  0x26   : > { %s1814_s11 = smov 192   ;;  %s1815_s12 = smov 12  }
  0x27   : > { %1533 = dma.hbm_to_vmem [thread:$0]  (!%p1902_p11), %s2211_s1, 3072, %s1895_s25, [#allocation7], %s1814_s11, %s1814_s11, %s1815_s12  }
  0x28   : > { %s1682_s27 = scalar_lea.hbm %s2212_s2, 1024 }
  0x29   : > { %p1683_p2 = scmp.ne.s32.totalorder %s2212_s2, %s1682_s27  ;;  %p1689_p10 = scmp.lt.u32.totalorder %s1682_s27, %s2212_s2 }
  0x2b   : > { %p1685_p1 = pnand %p1683_p2, %p1656_p13 }
  0x2d   : > { %p1686_p6 = pneg %p1685_p1 }
  0x2f   : > { %p1691_p3 = pnand %p1689_p10, %p1686_p6 }
  0x31   : > { %1694 = shalt.err (!%p1691_p3)
}
  0x32   : > { %s1695_s25 = scalar_lea.vmem %s1906_s28, 1024  ;;  %p1703_p12 = scmp.lt.s32.totalorder %s1906_s28, %s1906_s28 }
  0x33   : > { %p1696_p5 = scmp.ne.s32.totalorder %s1906_s28, %s1695_s25  ;;  %p1704_p0 = scmp.lt.s32.totalorder %s1695_s25, %s1695_s25 }
  0x35   : > { %p1698_p7 = pnand %p1696_p5, %p1656_p13  ;;  %p1705_p2 = por %p1704_p0, %p1703_p12 }
  0x37   : > { %p1699_p9 = pneg %p1698_p7 }
  0x39   : > { %p1706_p1 = pnand %p1705_p2, %p1699_p9 }
  0x3b   : > { %1709 = shalt.err (!%p1706_p1)
}
  0x3c   : > { %s1816_s7 = smov 64   ;;  %s1817_s8 = smov 4  }
  0x3d   : > { %1536 = dma.hbm_to_vmem [thread:$0]  (!%p1902_p11), %s2212_s2, 1024, %s1906_s28, [#allocation7], %s1816_s7, %s1816_s7, %s1817_s8  }
  0x3e   : > { %s1961_s11 = sadd.s32 1, %s1810_s18   ;;  %s28_s13 = sadd.s32 1, %s1806_s17 }
  0x3f   : > { %s25_s12 = ssub.s32 %s1810_s18, %s1961_s11  ;;  %p35_p6 = scmp.ne.s32.totalorder %s1806_s17, %s1802_s16 }
  0x40   : > { %p26_p13 = scmp.eq.s32.totalorder %s25_s12, 0  ;;  %p36_p10 = scmp.eq.s32.totalorder %s1810_s18, 0 }
  0x41   : > { %p2222_p5 = scmp.eq.s32.totalorder %s1872_s19, 1  ;;  %p1547_p9 = scmp.lt.s32.totalorder %s1810_s18, 2 }
  0x42   : > { %s1970_s14 = scalar_select %p26_p13, %s1806_s17, %s28_s13  }
  0x43   : > { %p37_p3 = por %p36_p10, %p35_p6  ;;  %p1974_p7 = por %p2222_p5, %p35_p6 }
  0x44   : > { %s183_s26 = sand.u32 1, %s1806_s17   ;;  %s1319_s28 = sshll.u32 %s1810_s18, 7 }
  0x45   : > { %s2223_s20 = scalar_select %p1974_p7, 1, 0 }
  0x46   : > { %s1318_s24 = sshll.u32 %s183_s26, 3  ;;  %s1984_s30 = scalar_lea.hbm %s2210_s0, %s1319_s28 }
  0x47   : > { %s187_s5 = scalar_lea.vmem [#allocation3], %s1318_s24  ;;  %p1988_p11 = pnand %p1547_p9, %p37_p3 }
  0x48   : > { %s194_s6 = sshll.u32 %s187_s5, 4  ;;  %s184_s7 = scalar_lea.sflag [#allocation4], %s183_s26  ;;  %s1986_s6 = int_to_ptr.vmem [resolvable:$true] %s194_s6 }
  0x49   : > { %s1710_s8 = scalar_lea.hbm %s1984_s30, 128  ;;  %p1712_p0 = pneg %p1988_p11 }
  0x4a   : > { %p1711_p12 = scmp.ne.s32.totalorder %s1984_s30, %s1710_s8  ;;  %s1715_s12 = scalar_lea.hbm %s2210_s0, 256 }
  0x4b   : > { %p1716_p13 = scmp.lt.u32.totalorder %s1984_s30, %s2210_s0  ;;  %p1717_p6 = scmp.lt.u32.totalorder %s1715_s12, %s1710_s8 }
  0x4c   : > { %p1713_p2 = pnand %p1712_p0, %p1711_p12  ;;  %p1719_p3 = scmp.lt.u32.totalorder %s1710_s8, %s1984_s30 }
  0x4d   : > { %p1718_p10 = por %p1717_p6, %p1716_p13 }
  0x4e   : > { %p1714_p1 = pneg %p1713_p2 }
  0x4f   : > { %p1720_p5 = por %p1719_p3, %p1718_p10 }
  0x51   : > { %p1721_p9 = pnand %p1720_p5, %p1714_p1 }
  0x53   : > { %1724 = shalt.err (!%p1721_p9)
}
  0x54   : > { %s1725_s26 = scalar_lea.vmem %s1986_s6, 128  ;;  %s1818_s28 = smov [#allocation3]  }
  0x55   : > { %p1726_p12 = scmp.ne.s32.totalorder %s1986_s6, %s1725_s26  ;;  %s1730_s27 = sshll.u32 %s1818_s28, 4  ;;  %s1731_s27 = int_to_ptr.vmem [resolvable:$false] %s1730_s27 }
  0x56   : > { %s1732_s29 = scalar_lea.vmem %s1731_s27, 256  ;;  %p1733_p4 = scmp.lt.s32.totalorder %s1986_s6, %s1731_s27 }
  0x57   : > { %p1728_p2 = pnand %p1726_p12, %p1712_p0  ;;  %p1734_p13 = scmp.lt.s32.totalorder %s1732_s29, %s1725_s26 }
  0x59   : > { %p1729_p7 = pneg %p1728_p2  ;;  %p1735_p6 = por %p1734_p13, %p1733_p4 }
  0x5b   : > { %p1736_p10 = pnand %p1735_p6, %p1729_p7 }
  0x5d   : > { %1739 = shalt.err (!%p1736_p10)
}
  0x5e   : > { %1540 = dma.hbm_to_vmem [thread:$0]  (!%p1988_p11), %s1984_s30, 128, %s1986_s6, %s184_s7  }
  0x5f   : > { %203 = sbr.rel (%p1891_p8) target bundleno = 2285 (0x8ed), region = 36  ;;  %s2020_s5 = sand.u32 (!%p1891_p8), 1, %s1802_s16  }
  0x60   : > { %s1321_s8 = sshll.u32 (!%p1891_p8), %s2020_s5, 3  ;;  %s206_s9 = scalar_lea.sflag (!%p1891_p8), [#allocation4], %s2020_s5 }
  0x61   : > { %s2026_s10 = scalar_lea.vmem (!%p1891_p8), [#allocation3], %s1321_s8  ;;  %p2225_p4 = scmp.ne.s32.totalorder (!%p1891_p8), %s2218_s21, 0 }
  0x66   : > { %1785 = dma.done.wait (%p2225_p4), %s206_s9, 128  }
  0x67   : > { %1787 = vsyncadd (%p2225_p4), %s206_s9, 4294967168  ;;  %p2226_p7 = scmp.eq.s32.totalorder %s1872_s19, 0 }
  0x69   : > { %1789 = dma.done.wait (%p2226_p7), [#allocation7], 4096   ;;  %p2227_p8 = pmov %p2226_p7 }
  0x6a   : > { %v1819_v0 = vmov 0.0   ;;  %v1820_v1 = vmov 0   ;;  %vm1821_vm0 = vmmov 0   ;;  %v1595_v2 = vld [vmem:[#allocation6 + $0x4] ss:$12 sps:$4 sm:$0xff]   ;;  %vm510_vm1 = vcmask 261120  }
  0x6b   : > { %1791 = vsyncadd (%p2227_p8), [#allocation7], 4294963200  ;;  %1418 = vmatprep.subr.bf16.mxu1 %v1819_v0  ;;  %437 = vmatprep.mubr.bf16.mxu0 %v1820_v1  ;;  %v1597_v3 = vld [vmem:[#allocation6] ss:$12 sps:$4 sm:$0xff]   ;;  %v1598_v4 = vld [vmem:[#allocation6 + $0x1c] ss:$12 sps:$4 sm:$0xff]   ;;  %v501_v48 = vlaneseq }
  0x6c   : > { %1434 = vmatprep.mubr.msk.bf16.mxu1 %vm1821_vm0, %v1819_v0  ;;  %405 = vmatprep.subr.bf16.mxu0 %v1595_v2  ;;  %v1600_v5 = vld [vmem:[#allocation6 + $0x18] ss:$12 sps:$4 sm:$0xff]   ;;  %v1601_v6 = vld [vmem:[#allocation6 + $0x34] ss:$12 sps:$4 sm:$0xff]   ;;  %v1603_v8 = vld [vmem:[#allocation6 + $0x30] ss:$12 sps:$4 sm:$0xff]  }
  0x6d   : > { %406 = vmatpush1.bf16.msra.mxu0 %v1597_v3  ;;  %v1604_v7 = vld [vmem:[#allocation6 + $0x8] ss:$12 sps:$4 sm:$0xff]   ;;  %v1608_v9 = vld [vmem:[#allocation6 + $0x20] ss:$12 sps:$4 sm:$0xff]   ;;  %v1612_v11 = vld [vmem:[#allocation6 + $0x38] ss:$12 sps:$4 sm:$0xff]  }
  0x6e   : > { %407 = vmatprep.subr.bf16.mxu0 %v1598_v4  ;;  %1419 = vmatpush3.bf16.msra.mxu1 %v1604_v7  ;;  %v1605_v10 = vld [vmem:[#allocation6 + $0x4c] ss:$12 sps:$4 sm:$0xff]   ;;  %v1607_v12 = vld [vmem:[#allocation6 + $0x48] ss:$12 sps:$4 sm:$0xff]   ;;  %v1609_v13 = vld [vmem:[#allocation6 + $0x64] ss:$12 sps:$4 sm:$0xff]  }
  0x6f   : > { %1420 = vmatprep.subr.bf16.mxu1 %v1819_v0  ;;  %v1616_v14 = vld [vmem:[#allocation6 + $0x50] ss:$12 sps:$4 sm:$0xff]   ;;  %v1611_v15 = vld [vmem:[#allocation6 + $0x60] ss:$12 sps:$4 sm:$0xff]   ;;  %v1615_v17 = vld [vmem:[#allocation6 + $0x78] ss:$12 sps:$4 sm:$0xff]  }
  0x70   : > { %v1613_v16 = vld [vmem:[#allocation6 + $0x7c] ss:$12 sps:$4 sm:$0xff]   ;;  %v1617_v18 = vld [vmem:[#allocation6 + $0x94] ss:$12 sps:$4 sm:$0xff]   ;;  %v1621_v22 = vld [vmem:[#allocation6 + $0xac] ss:$12 sps:$4 sm:$0xff]  }
  0x71   : > { %408 = vmatpush1.bf16.msra.mxu0 %v1600_v5  ;;  %v1620_v19 = vld [vmem:[#allocation6 + $0x68] ss:$12 sps:$4 sm:$0xff]   ;;  %v1624_v20 = vld [vmem:[#allocation6 + $0x80] ss:$12 sps:$4 sm:$0xff]   ;;  %v1619_v21 = vld [vmem:[#allocation6 + $0x90] ss:$12 sps:$4 sm:$0xff]  }
  0x72   : > { %409 = vmatprep.subr.bf16.mxu0 %v1601_v6  ;;  %1421 = vmatpush3.bf16.msra.mxu1 %v1608_v9  ;;  %v1625_v23 = vld [vmem:[#allocation6 + $0x98] ss:$12 sps:$4 sm:$0xff]   ;;  %v1623_v24 = vld [vmem:[#allocation6 + $0xa8] ss:$12 sps:$4 sm:$0xff]   ;;  %v1626_v27 = vld [vmem:[#allocation6 + $0xb0] ss:$12 sps:$4 sm:$0xff]  }
  0x73   : > { %1422 = vmatprep.subr.bf16.mxu1 %v1819_v0  ;;  %v243_v25 = vld [vmem:[%s2026_s10] sm:$0xff]  ;;  %s1822_s21 = smov 96   ;;  %s1823_s23 = smov 64   ;;  %v2074_v49 = vshrl.u32 %v501_v48, 7  ;;  %v2076_v50 = vand.u32 127, %v501_v48  ;;  %vm558_vm3 = vcmask 64512  }
  0x74   : > { %v244_v26 = vpack.c.bf16 %v243_v25, %v243_v25  ;;  %vm572_vm4 = vcmask 1043456   ;;  %s1824_s30 = smov 32   ;;  %s1376_s7 = sshll.u32 %s1872_s19, 7 }
  0x75   : > { %410 = vmatpush1.bf16.msra.mxu0 %v1603_v8  ;;  %vm505_vm2 = vcmp.le.s32.totalorder %v2076_v50, %v2074_v49  ;;  %s241_s12 = scalar_lea.vmem [#allocation9], %s1321_s8  ;;  %s2166_s28 = scalar_lea.hbm %s2214_s4, %s1376_s7 }
  0x76   : > { %411 = vmatprep.subr.bf16.mxu0 %v1605_v10  ;;  %1423 = vmatpush3.bf16.msra.mxu1 %v1612_v11  ;;  %s1224_s13 = sshll.u32 %s241_s12, 4  ;;  %s1211_s19 = scalar_lea.sflag [#allocation5], %s2020_s5  ;;  %s2168_s13 = int_to_ptr.vmem [resolvable:$true] %s1224_s13 }
  0x77   : > { %1424 = vmatprep.subr.bf16.mxu1 %v1819_v0  ;;  %s1740_s27 = scalar_lea.vmem %s2168_s13, 128  ;;  %p2228_p0 = scmp.ne.s32.totalorder %s2223_s20, 0 }
  0x78   : > { %p1741_p11 = scmp.ne.s32.totalorder %s2168_s13, %s1740_s27  ;;  %s1825_s29 = smov [#allocation9]  }
  0x79   : > { %412 = vmatpush1.bf16.msra.mxu0 %v1607_v12  ;;  %s1744_s8 = sshll.u32 %s1825_s29, 4  ;;  %s1745_s8 = int_to_ptr.vmem [resolvable:$false] %s1744_s8 }
  0x7a   : > { %413 = vmatprep.subr.bf16.mxu0 %v1609_v13  ;;  %1425 = vmatpush3.bf16.msra.mxu1 %v1616_v14  ;;  %v1630_v13 = vld [vmem:[#allocation8] sm:$0xff]   ;;  %p1742_p1 = pnand %p1741_p11, %p2228_p0  ;;  %s1746_s9 = scalar_lea.vmem %s1745_s8, 256 }
  0x7b   : > { %1426 = vmatprep.subr.bf16.mxu1 %v1819_v0  ;;  %p1747_p5 = scmp.lt.s32.totalorder %s2168_s13, %s1745_s8  ;;  %p1748_p9 = scmp.lt.s32.totalorder %s1746_s9, %s1740_s27 }
  0x7c   : > { %p1743_p3 = pneg %p1742_p1 }
  0x7d   : > { %414 = vmatpush1.bf16.msra.mxu0 %v1611_v15  ;;  %p1749_p12 = por %p1748_p9, %p1747_p5 }
  0x7e   : > { %415 = vmatprep.subr.bf16.mxu0 %v1613_v16  ;;  %1427 = vmatpush3.bf16.msra.mxu1 %v1620_v19  ;;  %v1631_v16 = vld [vmem:[#allocation8 + $0x8] sm:$0xff]  }
  0x7f   : > { %1428 = vmatprep.subr.bf16.mxu1 %v1819_v0  ;;  %p1750_p2 = pnand %p1749_p12, %p1743_p3 }
  0x81   : > { %416 = vmatpush1.bf16.msra.mxu0 %v1615_v17  ;;  %v1632_v17 = vld [vmem:[#allocation8 + $0x10] sm:$0xff]  }
  0x82   : > { %417 = vmatprep.subr.bf16.mxu0 %v1617_v18  ;;  %1429 = vmatpush3.bf16.msra.mxu1 %v1624_v20  ;;  %v1633_v18 = vld [vmem:[#allocation8 + $0x18] sm:$0xff]  }
  0x83   : > { %1430 = vmatprep.subr.bf16.mxu1 %v1819_v0 }
  0x85   : > { %418 = vmatpush1.bf16.msra.mxu0 %v1619_v21 }
  0x86   : > { %419 = vmatprep.subr.bf16.mxu0 %v1621_v22  ;;  %1431 = vmatpush3.bf16.msra.mxu1 %v1625_v23 }
  0x87   : > { %1432 = vmatprep.subr.bf16.mxu1 %v1819_v0 }
  0x89   : > { %420 = vmatpush1.bf16.msra.mxu0 %v1623_v24 }
  0x8a   : > { %1438 = vmatprep.subr.bf16.mxu0 %v1819_v0  ;;  %1433 = vmatpush3.bf16.msra.mxu1 %v1626_v27 }
  0x8b   : > { %1444 = vmatprep.subr.bf16.mxu1 %v1819_v0 }
  0x8c   : > { %438 = vmatmul.mubr.bf16.vlgmr.msra.gmra.mrb[0].mxu0 %v244_v26 }
  0x8d   : > { %1440 = vmatprep.mubr.msk.bf16.mxu0 %vm1821_vm0, %v1819_v0  ;;  %1435 = vmatmul.mubr.bf16.vlgmr.msra.gmra.mrb[0].mxu1 %v244_v26 }
  0x8e   : > { %1446 = vmatprep.mubr.msk.bf16.mxu1 %vm1821_vm0, %v1819_v0 }
 0x15f   : > { %v439_v28 = vpop.f32.mrb[0].mxu0 }
 0x160   : > { %v441_v29 = vpop.f32.mrb[1].mxu0  ;;  %v480_v33 = vpop.f32.mrb[0].mxu1 }
 0x161   : > { %v1379_v30 = vpack.c.bf16 %v441_v29, %v439_v28  ;;  %v443_v31 = vpop.f32.mrb[2].mxu0  ;;  %v1380_v34 = vpack.c.bf16 %v480_v33, %v480_v33  ;;  %v1436_v35 = vpop.f32.mrb[1].mxu1 }
 0x162   : > { %v444_v32 = vpop.f32.mrb[3].mxu0  ;;  %v483_v36 = vpop.f32.mrb[2].mxu1 }
 0x163   : > { %499 = vst [vmem:[#allocation2] sm:$0xff] %v1379_v30  ;;  %500 = vst [vmem:[#allocation2 + $0x8] sm:$0xf] %v1380_v34  ;;  %v1437_v37 = vpop.f32.mrb[3].mxu1 }
 0x16a   : > { %v508_v38 = vld [vmem:[#allocation2 + $0x4] sm:$0xf]  ;;  %v507_v41 = vld [vmem:[#allocation2] sm:$0xf]  ;;  %v509_v42 = vld [vmem:[#allocation2 + $0x8] sm:$0xf] }
 0x16b   : > { %v515_v39 = vsel %vm510_vm1, %v508_v38, 0  ;;  %v2054_v40 = vcombine.low %v508_v38, %v508_v38  ;;  %v2058_v43 = vcombine.low %v507_v41, %v507_v41  ;;  %v2061_v44 = vcombine.low %v509_v42, %v509_v42 }
 0x16c   : > { %1439 = vmatpush3.bf16.xpose.msra.mxu0 %v515_v39  ;;  %v574_v57 = vsel %vm572_vm4, %v509_v42, 0 }
 0x16d   : > { %631 = vrot.lane.b32.xlu0 %v2054_v40, %s1822_s21  ;;  %1450 = vmatprep.subr.bf16.mxu0 %v1819_v0 }
 0x16e   : > { %1445 = vmatpush3.bf16.msra.mxu1 %v574_v57 }
 0x16f   : > { %1456 = vmatprep.subr.bf16.mxu1 %v1819_v0 }
 0x171   : > { %626 = vrot.lane.b32.xlu0 %v2058_v43, %s1822_s21 }
 0x173   : > { %1441 = vmatmul.mubr.msk.bf16.vlgmr.msra.gmra.mrb[4].mxu0 %vm510_vm1, %v507_v41 }
 0x174   : > { %1452 = vmatprep.mubr.msk.bf16.mxu0 %vm1821_vm0, %v1819_v0 }
 0x175   : > { %693 = vrot.lane.b32.xlu0 %v2061_v44, %s1822_s21 }
 0x179   : > { %860 = vrot.lane.b32.xlu0 %v2054_v40, %s1823_s23 }
 0x1df   : > { %v632_v45 = vpop.permute.xlu0 %631 }
 0x1e0   : > { %v637_v46 = vsel %vm510_vm1, %v632_v45, 0 }
 0x1e1   : > { %1451 = vmatpush3.bf16.xpose.msra.mxu0 %v637_v46 }
 0x1e2   : > { %1462 = vmatprep.subr.bf16.mxu0 %v1819_v0 }
 0x1e3   : > { %v627_v47 = vpop.permute.xlu0 %626 }
 0x1e7   : > { %v694_v5 = vpop.permute.xlu0 %693 }
 0x1e8   : > { %1453 = vmatmul.mubr.msk.bf16.vlgmr.msra.gmra.mrb[8].mxu0 %vm510_vm1, %v627_v47  ;;  %v699_v6 = vsel %vm572_vm4, %v694_v5, 0  ;;  %v1635_v5 = vld [vmem:[#allocation8 + $0x28] sm:$0xff]  }
 0x1e9   : > { %1466 = vmatprep.mubr.msk.bf16.mxu0 %vm1821_vm0, %v1819_v0  ;;  %1463 = vmatpush3.bf16.msra.mxu0 %v1632_v17 }
 0x1ea   : > { %1464 = vmatprep.subr.bf16.mxu0 %v1819_v0 }
 0x1eb   : > { %v861_v19 = vpop.permute.xlu0 %860 }
 0x1ec   : > { %v866_v38 = vsel %vm510_vm1, %v861_v19, 0 }
 0x1ed   : > { %1465 = vmatpush3.bf16.msra.mxu0 %v1633_v18 }
 0x1ee   : > { %1478 = vmatprep.subr.bf16.mxu0 %v1819_v0 }
 0x246   : > { %v551_v51 = vpop.f32.mrb[4].mxu0 }
 0x247   : > { %v557_v52 = vsel %vm505_vm2, %v551_v51, -1e+30  ;;  %v1442_v53 = vpop.f32.mrb[5].mxu0 }
 0x248   : > { %v554_v54 = vpop.f32.mrb[6].mxu0  ;;  %v559_v55 = vsel %vm558_vm3, %v557_v52, -inf }
 0x249   : > { %560 = vmax.xlane.f32.xlu1 %v559_v55  ;;  %v1443_v56 = vpop.f32.mrb[7].mxu0 }
 0x2bb   : > { %v673_v58 = vpop.f32.mrb[8].mxu0 }
 0x2bc   : > { %v679_v59 = vsel %vm505_vm2, %v673_v58, -1e+30  ;;  %v1454_v60 = vpop.f32.mrb[9].mxu0 }
 0x2bd   : > { %v676_v61 = vpop.f32.mrb[10].mxu0  ;;  %v680_v62 = vsel %vm558_vm3, %v679_v59, -inf }
 0x2be   : > { %681 = vmax.xlane.f32.xlu1 %v680_v62  ;;  %v1455_v63 = vpop.f32.mrb[11].mxu0 }
 0x2d6   : > { %v561_v1 = vpop.xlane.xlu1 %560 }
 0x2d7   : > { %v562_v2 = vsub.f32 %v557_v52, %v561_v1 }
 0x2d9   : > { %v563_v3 = vmul.f32 1.442695, %v562_v2 }
 0x2db   : > { %1638 = vpow2.f32 %v563_v3 }
 0x2e5   : > { %v1639_v4 = vpop.eup %1638 }
 0x2e6   : > { %v565_v7 = vsel %vm558_vm3, %v1639_v4, 0.0  ;;  %v568_v8 = vpack.c.bf16 %v1639_v4, %v1639_v4  ;;  %v1634_v4 = vld [vmem:[#allocation8 + $0x20] sm:$0xff]  }
 0x2e7   : > { %566 = vadd.xlane.f32.xlu0 %v565_v7 }
 0x2e8   : > { %1447 = vmatmul.mubr.msk.bf16.vlgmr.msra.gmra.mrb[4].mxu1 %vm558_vm3, %v568_v8 }
 0x2e9   : > { %1457 = vmatpush3.bf16.msra.mxu1 %v699_v6  ;;  %1458 = vmatprep.mubr.msk.bf16.mxu1 %vm1821_vm0, %v1819_v0 }
 0x2ea   : > { %1470 = vmatprep.subr.bf16.mxu1 %v1819_v0 }
 0x2fd   : > { %919 = vrot.lane.b32.xlu0 %v2061_v44, %s1823_s23 }
 0x301   : > { %1030 = vrot.lane.b32.xlu0 %v2058_v43, %s1824_s30 }
 0x34b   : > { %v682_v9 = vpop.xlane.xlu1 %681 }
 0x34c   : > { %v683_v10 = vsub.f32 %v679_v59, %v682_v9 }
 0x34e   : > { %v684_v11 = vmul.f32 1.442695, %v683_v10 }
 0x350   : > { %1640 = vpow2.f32 %v684_v11 }
 0x35a   : > { %v1641_v12 = vpop.eup %1640 }
 0x35b   : > { %v686_v14 = vsel %vm558_vm3, %v1641_v12, 0.0  ;;  %v689_v15 = vpack.c.bf16 %v1641_v12, %v1641_v12 }
 0x35c   : > { %687 = vadd.xlane.f32.xlu1 %v686_v14 }
 0x35d   : > { %1459 = vmatmul.mubr.msk.bf16.vlgmr.msra.gmra.mrb[8].mxu1 %vm558_vm3, %v689_v15 }
 0x35e   : > { %1471 = vmatpush3.bf16.msra.mxu1 %v1630_v13  ;;  %1474 = vmatprep.mubr.msk.bf16.mxu1 %vm1821_vm0, %v1819_v0 }
 0x35f   : > { %1472 = vmatprep.subr.bf16.mxu1 %v1819_v0 }
 0x362   : > { %1473 = vmatpush3.bf16.msra.mxu1 %v1631_v16 }
 0x363   : > { %1484 = vmatprep.subr.bf16.mxu1 %v1819_v0 }
 0x36d   : > { %858 = vrot.lane.b32.xlu1 %v2058_v43, %s1823_s23 }
 0x374   : > { %v567_v20 = vpop.xlane.xlu0 %566 }
 0x375   : > { %1642 = vrcp.f32 %v567_v20 }
 0x378   : > { %v920_v25 = vpop.permute.xlu0 %919 }
 0x379   : > { %v925_v29 = vsel %vm572_vm4, %v920_v25, 0 }
 0x37f   : > { %v1643_v21 = vpop.eup %1642 }
 0x3bb   : > { %v610_v22 = vpop.f32.mrb[4].mxu1 }
 0x3bc   : > { %v617_v23 = vmul.f32 %v1643_v21, %v610_v22  ;;  %v1448_v24 = vpop.f32.mrb[5].mxu1 }
 0x3bd   : > { %v613_v26 = vpop.f32.mrb[6].mxu1 }
 0x3be   : > { %v618_v27 = vpack.c.bf16 %v617_v23, %v617_v23  ;;  %v1449_v28 = vpop.f32.mrb[7].mxu1 }
 0x3c0   : > { %1475 = vmatmul.mubr.msk.bf16.vlgmr.msra.gmra.mrb[12].mxu1 %vm510_vm1, %v618_v27  ;;  %v1636_v27 = vld [vmem:[#allocation8 + $0x30] sm:$0xff]  }
 0x3c1   : > { %1485 = vmatpush3.bf16.msra.mxu1 %v925_v29  ;;  %1486 = vmatprep.mubr.msk.bf16.mxu1 %vm1821_vm0, %v1819_v0 }
 0x3c2   : > { %1498 = vmatprep.subr.bf16.mxu1 %v1819_v0 }
 0x3e9   : > { %v688_v30 = vpop.xlane.xlu1 %687 }
 0x3ea   : > { %1644 = vrcp.f32 %v688_v30 }
 0x3ed   : > { %v859_v39 = vpop.permute.xlu1 %858 }
 0x3f4   : > { %v1645_v31 = vpop.eup %1644 }
 0x430   : > { %v735_v32 = vpop.f32.mrb[8].mxu1 }
 0x431   : > { %v742_v33 = vmul.f32 %v1645_v31, %v735_v32  ;;  %v1460_v34 = vpop.f32.mrb[9].mxu1  ;;  %v1637_v31 = vld [vmem:[#allocation8 + $0x38] sm:$0xff]  }
 0x432   : > { %v738_v35 = vpop.f32.mrb[10].mxu1 }
 0x433   : > { %v743_v36 = vpack.c.bf16 %v742_v33, %v742_v33  ;;  %v1461_v37 = vpop.f32.mrb[11].mxu1 }
 0x435   : > { %1467 = vmatmul.mubr.msk.bf16.vlgmr.msra.gmra.mrb[12].mxu0 %vm510_vm1, %v743_v36 }
 0x436   : > { %1479 = vmatpush3.bf16.xpose.msra.mxu0 %v866_v38  ;;  %1480 = vmatprep.mubr.msk.bf16.mxu0 %vm1821_vm0, %v1819_v0 }
 0x437   : > { %1490 = vmatprep.subr.bf16.mxu0 %v1819_v0 }
 0x43d   : > { %1481 = vmatmul.mubr.msk.bf16.vlgmr.msra.gmra.mrb[16].mxu0 %vm510_vm1, %v859_v39  ;;  %v1374_v39 = vld [vmem:[%s2213_s3] ss:$0 sm:$0xff] }
 0x43e   : > { %1494 = vmatprep.mubr.msk.bf16.mxu0 %vm1821_vm0, %v1819_v0  ;;  %1491 = vmatpush3.bf16.msra.mxu0 %v1634_v4 }
 0x43f   : > { %1492 = vmatprep.subr.bf16.mxu0 %v1819_v0 }
 0x442   : > { %1493 = vmatpush3.bf16.msra.mxu0 %v1635_v5 }
 0x443   : > { %1504 = vmatprep.subr.bf16.mxu0 %v1819_v0 }
 0x493   : > { %v852_v41 = vpop.f32.mrb[12].mxu1 }
 0x494   : > { %v1476_v42 = vpop.f32.mrb[13].mxu1 }
 0x495   : > { %v855_v43 = vpop.f32.mrb[14].mxu1 }
 0x496   : > { %v1477_v45 = vpop.f32.mrb[15].mxu1 }
 0x508   : > { %v797_v46 = vpop.f32.mrb[12].mxu0 }
 0x509   : > { %v2123_v47 = vadd.f32 %v852_v41, %v797_v46  ;;  %v1468_v48 = vpop.f32.mrb[13].mxu0 }
 0x50a   : > { %v800_v51 = vpop.f32.mrb[14].mxu0 }
 0x50b   : > { %v1469_v52 = vpop.f32.mrb[15].mxu0 }
 0x510   : > { %v902_v53 = vpop.f32.mrb[16].mxu0 }
 0x511   : > { %v908_v54 = vsel %vm505_vm2, %v902_v53, -1e+30  ;;  %v1482_v55 = vpop.f32.mrb[17].mxu0 }
 0x512   : > { %v905_v56 = vpop.f32.mrb[18].mxu0  ;;  %v909_v57 = vsel %vm558_vm3, %v908_v54, -inf }
 0x513   : > { %910 = vmax.xlane.f32.xlu1 %v909_v57  ;;  %v1483_v58 = vpop.f32.mrb[19].mxu0 }
 0x524   : > { %1032 = vrot.lane.b32.xlu1 %v2054_v40, %s1824_s30  ;;  %v1031_v40 = vpop.permute.xlu0 %1030 }
 0x5a0   : > { %v911_v59 = vpop.xlane.xlu1 %910 }
 0x5a1   : > { %v912_v60 = vsub.f32 %v908_v54, %v911_v59 }
 0x5a3   : > { %v913_v61 = vmul.f32 1.442695, %v912_v60 }
 0x5a4   : > { %v1033_v63 = vpop.permute.xlu1 %1032 }
 0x5a5   : > { %1646 = vpow2.f32 %v913_v61  ;;  %v1038_v3 = vsel %vm510_vm1, %v1033_v63, 0 }
 0x5af   : > { %v1647_v62 = vpop.eup %1646 }
 0x5b0   : > { %v915_v1 = vsel %vm558_vm3, %v1647_v62, 0.0  ;;  %v918_v2 = vpack.c.bf16 %v1647_v62, %v1647_v62 }
 0x5b1   : > { %916 = vadd.xlane.f32.xlu0 %v915_v1 }
 0x5b2   : > { %1487 = vmatmul.mubr.msk.bf16.vlgmr.msra.gmra.mrb[16].mxu1 %vm558_vm3, %v918_v2 }
 0x5b3   : > { %1499 = vmatpush3.bf16.xpose.msra.mxu1 %v1038_v3  ;;  %1500 = vmatprep.mubr.msk.bf16.mxu1 %vm1821_vm0, %v1819_v0 }
 0x5b4   : > { %1510 = vmatprep.subr.bf16.mxu1 %v1819_v0 }
 0x5ba   : > { %1501 = vmatmul.mubr.msk.bf16.vlgmr.msra.gmra.mrb[20].mxu1 %vm510_vm1, %v1031_v40 }
 0x5bb   : > { %1514 = vmatprep.mubr.msk.bf16.mxu1 %vm1821_vm0, %v1819_v0  ;;  %1511 = vmatpush3.bf16.msra.mxu1 %v1636_v27 }
 0x5bc   : > { %1512 = vmatprep.subr.bf16.mxu1 %v1819_v0 }
 0x5bf   : > { %1513 = vmatpush3.bf16.msra.mxu1 %v1637_v31 }
 0x5c7   : > { %1091 = vrot.lane.b32.xlu0 %v2061_v44, %s1824_s30 }
 0x63e   : > { %v917_v6 = vpop.xlane.xlu0 %916 }
 0x63f   : > { %1648 = vrcp.f32 %v917_v6 }
 0x642   : > { %v1092_v11 = vpop.permute.xlu0 %1091 }
 0x643   : > { %v1097_v15 = vsel %vm572_vm4, %v1092_v11, 0 }
 0x649   : > { %v1649_v7 = vpop.eup %1648 }
 0x685   : > { %v961_v8 = vpop.f32.mrb[16].mxu1 }
 0x686   : > { %v968_v9 = vmul.f32 %v1649_v7, %v961_v8  ;;  %v1488_v10 = vpop.f32.mrb[17].mxu1 }
 0x687   : > { %v964_v12 = vpop.f32.mrb[18].mxu1 }
 0x688   : > { %v969_v13 = vpack.c.bf16 %v968_v9, %v968_v9  ;;  %v1489_v14 = vpop.f32.mrb[19].mxu1 }
 0x68a   : > { %1495 = vmatmul.mubr.msk.bf16.vlgmr.msra.gmra.mrb[20].mxu0 %vm510_vm1, %v969_v13 }
 0x68b   : > { %1505 = vmatpush3.bf16.msra.mxu0 %v1097_v15  ;;  %1506 = vmatprep.mubr.msk.bf16.mxu0 %vm1821_vm0, %v1819_v0 }
 0x68d   : > { %v1074_v44 = vpop.f32.mrb[20].mxu1 }
 0x68e   : > { %v1080_v16 = vsel %vm505_vm2, %v1074_v44, -1e+30  ;;  %v1502_v17 = vpop.f32.mrb[21].mxu1 }
 0x68f   : > { %v1077_v18 = vpop.f32.mrb[22].mxu1  ;;  %v1081_v19 = vsel %vm558_vm3, %v1080_v16, -inf }
 0x690   : > { %1082 = vmax.xlane.f32.xlu1 %v1081_v19  ;;  %v1503_v20 = vpop.f32.mrb[23].mxu1 }
 0x71d   : > { %v1083_v21 = vpop.xlane.xlu1 %1082 }
 0x71e   : > { %v1084_v22 = vsub.f32 %v1080_v16, %v1083_v21 }
 0x720   : > { %v1085_v23 = vmul.f32 1.442695, %v1084_v22 }
 0x722   : > { %1650 = vpow2.f32 %v1085_v23 }
 0x72c   : > { %v1651_v24 = vpop.eup %1650 }
 0x72d   : > { %v1087_v25 = vsel %vm558_vm3, %v1651_v24, 0.0  ;;  %v1090_v26 = vpack.c.bf16 %v1651_v24, %v1651_v24 }
 0x72e   : > { %1088 = vadd.xlane.f32.xlu1 %v1087_v25 }
 0x72f   : > { %1507 = vmatmul.mubr.msk.bf16.vlgmr.msra.gmra.mrb[24].mxu0 %vm558_vm3, %v1090_v26 }
 0x75d   : > { %v1023_v49 = vpop.f32.mrb[20].mxu0 }
 0x75e   : > { %v1029_v50 = vadd.f32 %v1023_v49, %v2123_v47  ;;  %v1496_v28 = vpop.f32.mrb[21].mxu0 }
 0x75f   : > { %v1026_v29 = vpop.f32.mrb[22].mxu0 }
 0x760   : > { %v1497_v30 = vpop.f32.mrb[23].mxu0 }
 0x7bb   : > { %v1089_v32 = vpop.xlane.xlu1 %1088 }
 0x7bc   : > { %1652 = vrcp.f32 %v1089_v32 }
 0x7c6   : > { %v1653_v33 = vpop.eup %1652 }
 0x802   : > { %v1133_v34 = vpop.f32.mrb[24].mxu0 }
 0x803   : > { %v1140_v35 = vmul.f32 %v1653_v33, %v1133_v34  ;;  %v1508_v36 = vpop.f32.mrb[25].mxu0 }
 0x804   : > { %v1136_v37 = vpop.f32.mrb[26].mxu0 }
 0x805   : > { %v1141_v38 = vpack.c.bf16 %v1140_v35, %v1140_v35  ;;  %v1509_v0 = vpop.f32.mrb[27].mxu0 }
 0x807   : > { %1515 = vmatmul.mubr.msk.bf16.vlgmr.msra.gmra.mrb[24].mxu1 %vm510_vm1, %v1141_v38 }
 0x8da   : > { %v1195_v41 = vpop.f32.mrb[24].mxu1 }
 0x8db   : > { %v1201_v42 = vadd.f32 %v1195_v41, %v1029_v50  ;;  %v1516_v43 = vpop.f32.mrb[25].mxu1 }
 0x8dc   : > { %v1198_v45 = vpop.f32.mrb[26].mxu1 }
 0x8dd   : > { %v1208_v46 = vadd.f32 %v1374_v39, %v1201_v42  ;;  %v1517_v47 = vpop.f32.mrb[27].mxu1 }
 0x8df   : > { %1209 = vst [vmem:[%s241_s12] sm:$0xff] %v1208_v46 }
 0x8e0   : > { %1753 = shalt.err (!%p1750_p2)
}
 0x8e1   : > { %s1754_s5 = scalar_lea.hbm %s2166_s28, 128  ;;  %s1758_s23 = scalar_lea.hbm %s2214_s4, 256 }
 0x8e2   : > { %p1755_p13 = scmp.ne.s32.totalorder %s2166_s28, %s1754_s5  ;;  %p1759_p4 = scmp.lt.u32.totalorder %s2166_s28, %s2214_s4 }
 0x8e3   : > { %p1760_p7 = scmp.lt.u32.totalorder %s1758_s23, %s1754_s5  ;;  %p1762_p11 = scmp.lt.u32.totalorder %s1754_s5, %s2166_s28 }
 0x8e4   : > { %p1756_p6 = pnand %p1755_p13, %p2228_p0 }
 0x8e5   : > { %p1761_p8 = por %p1760_p7, %p1759_p4 }
 0x8e6   : > { %p1757_p10 = pneg %p1756_p6 }
 0x8e7   : > { %p1763_p1 = por %p1762_p11, %p1761_p8 }
 0x8e9   : > { %p1764_p3 = pnand %p1763_p1, %p1757_p10 }
 0x8eb   : > { %1767 = shalt.err (!%p1764_p3)
}
 0x8ec   : > { %1528 = dma.vmem_to_hbm [thread:$0]  (%p2228_p0), %s2168_s13, 128, %s2166_s28, %s1211_s19  }
 0x8ed PF: > { %s1236_s25 = sand.u32 1, %s1798_s15   ;;  %p2229_p5 = scmp.ne.s32.totalorder %s2219_s22, 0 }
 0x8ee   : > { %p2230_p9 = scmp.ge.s32.totalorder %s1810_s18, 2  ;;  %s1237_s7 = scalar_lea.sflag [#allocation5], %s1236_s25 }
 0x8f0   : > { %p1542_p12 = pnand %p2230_p9, %p2229_p5 }
 0x8f2   : > { %1793 = dma.done.wait (!%p1542_p12), %s1237_s7, 128  }
 0x8f3   : > { %1795 = vsyncadd (!%p1542_p12), %s1237_s7, 4294967168  ;;  %p18_p2 = scmp.ge.s32.totalorder %s1961_s11, 4   ;;  %s2231_s15 = smov %s1802_s16 }
 0x8f4   : > { %s2232_s16 = smov %s1806_s17  ;;  %s2233_s17 = smov %s1970_s14 }
 0x8f5   : > { %s2234_s18 = smov %s1961_s11  ;;  %20 = sbr.rel (!%p18_p2) target bundleno = 6 (0x6), region = 89 }
 0x8fc   :  { %1242 = vsyncpa [#allocation4], 1 }
 0x8fd   :  { %1244 = vsyncpa [#allocation4 + $0x1], 1 }
 0x8fe   :  { %1245 = vsyncpa [#allocation7], 1 }
 0x8ff   :  { %1246 = vsyncpa [#allocation5], 1 }
 0x900   :  { %1248 = vsyncpa [#allocation5 + $0x1], 1 }

</bundles_post_ra>
